<compile_context>
chip_gen: v6e
topology: v6e:2x2x1
jax: 0.10.0
libtpu: 0.0.40
codegen_flags: <defaults>
</compile_context>

<pallas_src>
import functools
import math

import jax
import jax.numpy as jnp
from jax import lax
from jax.experimental import pallas as pl
from jax.experimental.pallas import tpu as pltpu


def _round_up(x, m):
    return (x + m - 1) // m * m


def _next_pow2(x):
    return 1 if x <= 1 else 1 << (x - 1).bit_length()


def _circle_loss_kernel(xr_ref, xc_ref, t_col_ref, t_row_ref, out_ref,
                        m_pos_ref, s_pos_ref, m_neg_ref, s_neg_ref,
                        *, scale, margin, n_valid, tm, tn):
    i = pl.program_id(0)          # row-tile index  ("parallel")
    j = pl.program_id(1)          # column-tile index ("arbitrary" / reduction)
    nj = pl.num_programs(1)

    s = jnp.float32(scale)
    m = jnp.float32(margin)
    neg_big = jnp.float32(-99999999.0)

    # ---- init online-logsumexp state at the first column tile --------------
    @pl.when(j == 0)
    def _():
        m_pos_ref[...] = jnp.full_like(m_pos_ref, neg_big)
        m_neg_ref[...] = jnp.full_like(m_neg_ref, neg_big)
        s_pos_ref[...] = jnp.zeros_like(s_pos_ref)
        s_neg_ref[...] = jnp.zeros_like(s_neg_ref)

    # ---- similarity tile: (TM, D) . (TN, D)^T -- no transpose materialized --
    sim = lax.dot_general(xr_ref[...], xc_ref[...],
                          dimension_numbers=(((1,), (1,)), ((), ())),
                          preferred_element_type=jnp.float32)   # (TM, TN) f32

    # ---- boolean masks (no float mask / eye temporaries) --------------------
    same = t_col_ref[...] == t_row_ref[...]                     # (TM, TN)
    row_ids = i * tm + lax.broadcasted_iota(jnp.int32, sim.shape, 0)
    col_ids = j * tn + lax.broadcasted_iota(jnp.int32, sim.shape, 1)
    col_valid = col_ids < n_valid                               # mask padded cols
    pos_mask = same & (row_ids != col_ids) & col_valid
    neg_mask = jnp.logical_not(same) & col_valid

    # ---- unified score polynomial f(u) = s*relu(u+m)*(u-m) ------------------
    #   positives: u = 1 - sim  ->  s*relu(1+m-sim)*(1-m-sim)
    #   negatives: u = sim      ->  s*relu(sim+m)  *(sim-m)
    u = jnp.where(same, 1.0 - sim, sim)
    score = s * jnp.maximum(u + m, 0.0) * (u - m)

    pos_arg = jnp.where(pos_mask, score, neg_big)
    neg_arg = jnp.where(neg_mask, score, neg_big)

    # ---- online (streaming) logsumexp over column tiles ---------------------
    # NOTE: pos/neg keep separate running maxima -- their score ranges differ
    # by ~scale, so a shared max would underflow one of the two sets.
    def lse_update(m_ref, s_ref, a):
        m_old = m_ref[...]
        m_new = jnp.maximum(m_old, jnp.max(a, axis=1, keepdims=True))
        s_ref[...] = (s_ref[...] * jnp.exp(m_old - m_new)
                      + jnp.sum(jnp.exp(a - m_new), axis=1, keepdims=True))
        m_ref[...] = m_new

    # TODO(synk): on v6e/v7x the two exp() passes could be evaluated in bf16
    # (EUP bf16 path ~2x) if a bundle profile shows EUP saturation; keep f32
    # for v5e (no bf16 EUP/VPU path).
    lse_update(m_pos_ref, s_pos_ref, pos_arg)
    lse_update(m_neg_ref, s_neg_ref, neg_arg)

    # ---- finalize: softplus(lse_neg + lse_pos); zero padded rows ------------
    @pl.when(j == nj - 1)
    def _():
        lse_pos = m_pos_ref[...] + jnp.log(s_pos_ref[...])
        lse_neg = m_neg_ref[...] + jnp.log(s_neg_ref[...])
        z = lse_pos + lse_neg                                    # (TM, 1)
        sp = jnp.maximum(z, 0.0) + jnp.log1p(jnp.exp(-jnp.abs(z)))  # softplus
        row_valid = (i * tm + lax.broadcasted_iota(jnp.int32, z.shape, 0)) < n_valid
        out_ref[...] = jnp.where(row_valid, sp, jnp.float32(0.0))


def pairwise_circle_loss(inputs, targets, scale=48.0, margin=0.35,
                         tm=256, tn=512):
    n, d = inputs.shape

    # ---- hoisted L2 normalization (f32) -> single bf16 MXU operand ----------
    x32 = inputs.astype(jnp.float32)
    inv = lax.rsqrt(jnp.maximum(jnp.sum(x32 * x32, axis=1, keepdims=True),
                                jnp.float32(1e-24)))
    xn = (x32 * inv).astype(jnp.bfloat16)

    # ---- tile sizing ---------------------------------------------------------
    # TM multiple of 8 (ideally 256 for the v6e/v7x MXU), TN multiple of 128
    # (lanes).  N is padded to a common multiple of both tile sizes.
    tm = _round_up(min(tm, max(8, _next_pow2(n))), 8)
    tn = _round_up(min(tn, max(128, _next_pow2(n))), 128)
    n_pad = _round_up(n, math.lcm(tm, tn))
    if n_pad // tm < 2 and tm > 8:          # keep both v7x TensorCores busy
        tm = _round_up(max(tm // 2, 8), 8)
        n_pad = _round_up(n, math.lcm(tm, tn))
    num_row_tiles = n_pad // tm
    num_col_tiles = n_pad // tn

    t = targets.astype(jnp.int32)
    if n_pad != n:
        xn = jnp.pad(xn, ((0, n_pad - n), (0, 0)))
        t = jnp.pad(t, (0, n_pad - n), constant_values=-1)
    t_col = t.reshape(n_pad, 1)
    t_row = t.reshape(1, n_pad)

    kernel = functools.partial(
        _circle_loss_kernel, scale=float(scale), margin=float(margin),
        n_valid=n, tm=tm, tn=tn)

    # VMEM budget: double-buffered bf16 tiles + label tiles + output block +
    # online-lse scratch + ~8 TMxTN f32 temporaries; 2x headroom, clamped so it
    # is safe on every generation (<= 48 MiB).
    vmem_est = (2 * tm * d * 2 + 2 * tn * d * 2 + 2 * (tm + tn) * 4
                + 2 * tm * 4 + 4 * tm * 4 + 8 * tm * tn * 4)
    vmem_limit = int(min(max(2 * vmem_est, 24 * 1024 * 1024), 48 * 1024 * 1024))

    cost = pl.CostEstimate(
        flops=2 * n_pad * n_pad * d,
        transcendentals=2 * n_pad * n_pad,
        bytes_accessed=(num_row_tiles + 1) * n_pad * d * 2 + n_pad * 12)

    per_row = pl.pallas_call(
        kernel,
        out_shape=jax.ShapeDtypeStruct((n_pad, 1), jnp.float32),
        grid=(num_row_tiles, num_col_tiles),
        in_specs=[
            pl.BlockSpec((tm, d), lambda i, j: (i, 0)),   # row tile (LHS), bf16
            pl.BlockSpec((tn, d), lambda i, j: (j, 0)),   # column tile (RHS), bf16
            pl.BlockSpec((tm, 1), lambda i, j: (i, 0)),   # labels, column form
            pl.BlockSpec((1, tn), lambda i, j: (0, j)),   # labels, row form
        ],
        out_specs=pl.BlockSpec((tm, 1), lambda i, j: (i, 0)),
        scratch_shapes=[pltpu.VMEM((tm, 1), jnp.float32)] * 4,
        compiler_params=pltpu.CompilerParams(
            dimension_semantics=("parallel", "arbitrary"),
            vmem_limit_bytes=vmem_limit),
        cost_estimate=cost,
    )(xn, xn, t_col, t_row)

    return jnp.sum(per_row) / n


def reference_loss(inputs, targets, scale=48.0, margin=0.35):
    x = inputs.astype(jnp.float32)
    xn = x / jnp.maximum(jnp.linalg.norm(x, axis=1, keepdims=True), 1e-12)
    sim = xn @ xn.T
    mask = (targets[:, None] == targets[None, :]).astype(jnp.float32)
    eye = jnp.eye(x.shape[0], dtype=jnp.float32)
    mask_pos = mask - eye
    mask_neg = 1.0 - mask
    pos_scale = scale * jax.nn.relu(1.0 + margin - sim)
    neg_scale = scale * jax.nn.relu(sim + margin)
    scale_matrix = pos_scale * mask_pos + neg_scale * mask_neg
    scores = ((sim - margin) * mask_neg + (1.0 - margin - sim) * mask_pos) * scale_matrix
    neg_lse = jax.scipy.special.logsumexp(
        scores * mask_neg - 99999999.0 * (1.0 - mask_neg), axis=1)
    pos_lse = jax.scipy.special.logsumexp(
        scores * mask_pos - 99999999.0 * (1.0 - mask_pos), axis=1)
    return jnp.mean(jax.nn.softplus(neg_lse + pos_lse))


if __name__ == "__main__":
    key = jax.random.PRNGKey(0)
    # N not a multiple of the tile -> exercises padding + multiple row tiles.
    N, D = 24, 64
    x = jax.random.normal(key, (N, D), dtype=jnp.float32)
    targets = jnp.arange(N, dtype=jnp.int32) // 2      # 12 classes, 2 samples each

    loss = pairwise_circle_loss(x, targets, scale=48.0, margin=0.35)
    jax.block_until_ready(loss)

    ref = reference_loss(x, targets, scale=48.0, margin=0.35)
    # bf16 MXU operands (f32 accumulation) -> allow ~1% relative slack.
    assert jnp.allclose(loss, ref, rtol=3e-2, atol=1e-2), (loss, ref)

    print("KERNEL_OK")
</pallas_src>

<mosaic_0001>
module attributes {stable_mosaic.version = 11 : i64} {
  func.func @_circle_loss_kernel(%arg0: i32, %arg1: i32, %arg2: memref<32x64xbf16, #tpu.memory_space<vmem>>, %arg3: memref<128x64xbf16, #tpu.memory_space<vmem>>, %arg4: memref<32x1xi32, #tpu.memory_space<vmem>>, %arg5: memref<1x128xi32, #tpu.memory_space<vmem>>, %arg6: memref<32x1xf32, #tpu.memory_space<vmem>>, %arg7: memref<32x1xf32, #tpu.memory_space<vmem>>, %arg8: memref<32x1xf32, #tpu.memory_space<vmem>>, %arg9: memref<32x1xf32, #tpu.memory_space<vmem>>, %arg10: memref<32x1xf32, #tpu.memory_space<vmem>>) attributes {dimension_semantics = [#tpu.dimension_semantics<parallel>, #tpu.dimension_semantics<arbitrary>], iteration_bounds = array<i64: 4, 1>, scalar_prefetch = 0 : i64, scratch_operands = 4 : i64, tpu.core_type = #tpu.core_type<tc>, window_params = [{transform_indices = @transform_0, window_bounds = array<i64: 32, 64>}, {transform_indices = @transform_1, window_bounds = array<i64: 128, 64>}, {transform_indices = @transform_2, window_bounds = array<i64: 32, 1>}, {transform_indices = @transform_3, window_bounds = array<i64: 1, 128>}, {transform_indices = @transform_4, window_bounds = array<i64: 32, 1>}]} {
    %c0_i32 = arith.constant 0 : i32
    %0 = arith.cmpi eq, %arg1, %c0_i32 : i32
    %1 = arith.extui %0 : i1 to i32
    %cst = arith.constant -1.000000e+08 : f32
    %c0_i32_0 = arith.constant 0 : i32
    %2 = arith.cmpi ne, %1, %c0_i32_0 : i32
    scf.if %2 {
      %77 = vector.broadcast %cst : f32 to vector<32x1xf32>
      %c0_39 = arith.constant 0 : index
      %c0_40 = arith.constant 0 : index
      %78 = vector.load %arg7[%c0_39, %c0_40] : memref<32x1xf32, #tpu.memory_space<vmem>>, vector<32x1xf32>
      tpu.vector_store %arg7[%c0_39, %c0_40], %77 {strides = array<i32>} : memref<32x1xf32, #tpu.memory_space<vmem>>, vector<32x1xf32>,
      %79 = vector.broadcast %cst : f32 to vector<32x1xf32>
      %c0_41 = arith.constant 0 : index
      %c0_42 = arith.constant 0 : index
      %80 = vector.load %arg9[%c0_41, %c0_42] : memref<32x1xf32, #tpu.memory_space<vmem>>, vector<32x1xf32>
      tpu.vector_store %arg9[%c0_41, %c0_42], %79 {strides = array<i32>} : memref<32x1xf32, #tpu.memory_space<vmem>>, vector<32x1xf32>,
      %cst_43 = arith.constant 0.000000e+00 : f32
      %81 = vector.broadcast %cst_43 : f32 to vector<32x1xf32>
      %c0_44 = arith.constant 0 : index
      %c0_45 = arith.constant 0 : index
      %82 = vector.load %arg8[%c0_44, %c0_45] : memref<32x1xf32, #tpu.memory_space<vmem>>, vector<32x1xf32>
      tpu.vector_store %arg8[%c0_44, %c0_45], %81 {strides = array<i32>} : memref<32x1xf32, #tpu.memory_space<vmem>>, vector<32x1xf32>,
      %cst_46 = arith.constant 0.000000e+00 : f32
      %83 = vector.broadcast %cst_46 : f32 to vector<32x1xf32>
      %c0_47 = arith.constant 0 : index
      %c0_48 = arith.constant 0 : index
      %84 = vector.load %arg10[%c0_47, %c0_48] : memref<32x1xf32, #tpu.memory_space<vmem>>, vector<32x1xf32>
      tpu.vector_store %arg10[%c0_47, %c0_48], %83 {strides = array<i32>} : memref<32x1xf32, #tpu.memory_space<vmem>>, vector<32x1xf32>,
    } else {
    }
    %c0 = arith.constant 0 : index
    %c0_1 = arith.constant 0 : index
    %3 = vector.load %arg2[%c0, %c0_1] : memref<32x64xbf16, #tpu.memory_space<vmem>>, vector<32x64xbf16>
    %c0_2 = arith.constant 0 : index
    %c0_3 = arith.constant 0 : index
    %4 = vector.load %arg3[%c0_2, %c0_3] : memref<128x64xbf16, #tpu.memory_space<vmem>>, vector<128x64xbf16>
    %cst_4 = arith.constant dense<0.000000e+00> : vector<32x128xf32>
    %5 = tpu.matmul %3, %4, %cst_4 {dimension_numbers = #tpu.dot_dimension_numbers<[1], [1], [0], [0], [0, 0, 1, 0], [], []>} : vector<32x64xbf16>, vector<128x64xbf16>, vector<32x128xf32> -> vector<32x128xf32>
    %c0_5 = arith.constant 0 : index
    %c0_6 = arith.constant 0 : index
    %6 = vector.load %arg4[%c0_5, %c0_6] : memref<32x1xi32, #tpu.memory_space<vmem>>, vector<32x1xi32>
    %c0_7 = arith.constant 0 : index
    %c0_8 = arith.constant 0 : index
    %7 = vector.load %arg5[%c0_7, %c0_8] : memref<1x128xi32, #tpu.memory_space<vmem>>, vector<1x128xi32>
    %8 = vector.broadcast %6 : vector<32x1xi32> to vector<32x128xi32>
    %9 = vector.broadcast %7 : vector<1x128xi32> to vector<32x128xi32>
    %10 = arith.cmpi eq, %8, %9 : vector<32x128xi32>
    %c32_i32 = arith.constant 32 : i32
    %11 = arith.muli %arg0, %c32_i32 : i32
    %12 = tpu.iota {dimensions = array<i32: 0>} : vector<32x128xi32>
    %13 = vector.broadcast %11 : i32 to vector<32x128xi32>
    %14 = arith.addi %13, %12 : vector<32x128xi32>
    %c128_i32 = arith.constant 128 : i32
    %15 = arith.muli %arg1, %c128_i32 : i32
    %16 = tpu.iota {dimensions = array<i32: 1>} : vector<32x128xi32>
    %17 = vector.broadcast %15 : i32 to vector<32x128xi32>
    %18 = arith.addi %17, %16 : vector<32x128xi32>
    %c24_i32 = arith.constant 24 : i32
    %19 = vector.broadcast %c24_i32 : i32 to vector<32x128xi32>
    %20 = arith.cmpi slt, %18, %19 : vector<32x128xi32>
    %21 = arith.cmpi ne, %14, %18 : vector<32x128xi32>
    %22 = arith.andi %10, %21 : vector<32x128xi1>
    %23 = arith.andi %22, %20 : vector<32x128xi1>
    %cst_9 = arith.constant dense<true> : vector<32x128xi1>
    %24 = arith.xori %10, %cst_9 : vector<32x128xi1>
    %25 = arith.andi %24, %20 : vector<32x128xi1>
    %cst_10 = arith.constant 1.000000e+00 : f32
    %26 = vector.broadcast %cst_10 : f32 to vector<32x128xf32>
    %27 = arith.subf %26, %5 : vector<32x128xf32>
    %28 = arith.select %10, %27, %5 : vector<32x128xi1>, vector<32x128xf32>
    %cst_11 = arith.constant 3.500000e-01 : f32
    %29 = vector.broadcast %cst_11 : f32 to vector<32x128xf32>
    %30 = arith.addf %28, %29 : vector<32x128xf32>
    %cst_12 = arith.constant 0.000000e+00 : f32
    %31 = vector.broadcast %cst_12 : f32 to vector<32x128xf32>
    %32 = arith.maximumf %30, %31 : vector<32x128xf32>
    %cst_13 = arith.constant 4.800000e+01 : f32
    %33 = vector.broadcast %cst_13 : f32 to vector<32x128xf32>
    %34 = arith.mulf %33, %32 : vector<32x128xf32>
    %cst_14 = arith.constant 3.500000e-01 : f32
    %35 = vector.broadcast %cst_14 : f32 to vector<32x128xf32>
    %36 = arith.subf %28, %35 : vector<32x128xf32>
    %37 = arith.mulf %34, %36 : vector<32x128xf32>
    %cst_15 = arith.constant -1.000000e+08 : f32
    %38 = vector.broadcast %cst_15 : f32 to vector<32x128xf32>
    %39 = arith.select %23, %37, %38 : vector<32x128xi1>, vector<32x128xf32>
    %cst_16 = arith.constant -1.000000e+08 : f32
    %40 = vector.broadcast %cst_16 : f32 to vector<32x128xf32>
    %41 = arith.select %25, %37, %40 : vector<32x128xi1>, vector<32x128xf32>
    %c0_17 = arith.constant 0 : index
    %c0_18 = arith.constant 0 : index
    %42 = vector.load %arg7[%c0_17, %c0_18] : memref<32x1xf32, #tpu.memory_space<vmem>>, vector<32x1xf32>
    %cst_19 = arith.constant dense<0xFF800000> : vector<32xf32>
    %43 = vector.multi_reduction <maximumf>, %39, %cst_19 [1] : vector<32x128xf32> to vector<32xf32>
    %44 = vector.shape_cast %43 : vector<32xf32> to vector<32x1xf32>
    %45 = arith.maximumf %42, %44 : vector<32x1xf32>
    %c0_20 = arith.constant 0 : index
    %c0_21 = arith.constant 0 : index
    %46 = vector.load %arg8[%c0_20, %c0_21] : memref<32x1xf32, #tpu.memory_space<vmem>>, vector<32x1xf32>
    %47 = arith.subf %42, %45 : vector<32x1xf32>
    %48 = math.exp %47 : vector<32x1xf32>
    %49 = arith.mulf %46, %48 : vector<32x1xf32>
    %50 = vector.broadcast %45 : vector<32x1xf32> to vector<32x128xf32>
    %51 = arith.subf %39, %50 : vector<32x128xf32>
    %52 = math.exp %51 : vector<32x128xf32>
    %cst_22 = arith.constant dense<0.000000e+00> : vector<32xf32>
    %53 = vector.multi_reduction <add>, %52, %cst_22 [1] : vector<32x128xf32> to vector<32xf32>
    %54 = vector.shape_cast %53 : vector<32xf32> to vector<32x1xf32>
    %55 = arith.addf %49, %54 : vector<32x1xf32>
    %c0_23 = arith.constant 0 : index
    %c0_24 = arith.constant 0 : index
    %56 = vector.load %arg8[%c0_23, %c0_24] : memref<32x1xf32, #tpu.memory_space<vmem>>, vector<32x1xf32>
    tpu.vector_store %arg8[%c0_23, %c0_24], %55 {strides = array<i32>} : memref<32x1xf32, #tpu.memory_space<vmem>>, vector<32x1xf32>,
    %c0_25 = arith.constant 0 : index
    %c0_26 = arith.constant 0 : index
    %57 = vector.load %arg7[%c0_25, %c0_26] : memref<32x1xf32, #tpu.memory_space<vmem>>, vector<32x1xf32>
    tpu.vector_store %arg7[%c0_25, %c0_26], %45 {strides = array<i32>} : memref<32x1xf32, #tpu.memory_space<vmem>>, vector<32x1xf32>,
    %c0_27 = arith.constant 0 : index
    %c0_28 = arith.constant 0 : index
    %58 = vector.load %arg9[%c0_27, %c0_28] : memref<32x1xf32, #tpu.memory_space<vmem>>, vector<32x1xf32>
    %cst_29 = arith.constant dense<0xFF800000> : vector<32xf32>
    %59 = vector.multi_reduction <maximumf>, %41, %cst_29 [1] : vector<32x128xf32> to vector<32xf32>
    %60 = vector.shape_cast %59 : vector<32xf32> to vector<32x1xf32>
    %61 = arith.maximumf %58, %60 : vector<32x1xf32>
    %c0_30 = arith.constant 0 : index
    %c0_31 = arith.constant 0 : index
    %62 = vector.load %arg10[%c0_30, %c0_31] : memref<32x1xf32, #tpu.memory_space<vmem>>, vector<32x1xf32>
    %63 = arith.subf %58, %61 : vector<32x1xf32>
    %64 = math.exp %63 : vector<32x1xf32>
    %65 = arith.mulf %62, %64 : vector<32x1xf32>
    %66 = vector.broadcast %61 : vector<32x1xf32> to vector<32x128xf32>
    %67 = arith.subf %41, %66 : vector<32x128xf32>
    %68 = math.exp %67 : vector<32x128xf32>
    %cst_32 = arith.constant dense<0.000000e+00> : vector<32xf32>
    %69 = vector.multi_reduction <add>, %68, %cst_32 [1] : vector<32x128xf32> to vector<32xf32>
    %70 = vector.shape_cast %69 : vector<32xf32> to vector<32x1xf32>
    %71 = arith.addf %65, %70 : vector<32x1xf32>
    %c0_33 = arith.constant 0 : index
    %c0_34 = arith.constant 0 : index
    %72 = vector.load %arg10[%c0_33, %c0_34] : memref<32x1xf32, #tpu.memory_space<vmem>>, vector<32x1xf32>
    tpu.vector_store %arg10[%c0_33, %c0_34], %71 {strides = array<i32>} : memref<32x1xf32, #tpu.memory_space<vmem>>, vector<32x1xf32>,
    %c0_35 = arith.constant 0 : index
    %c0_36 = arith.constant 0 : index
    %73 = vector.load %arg9[%c0_35, %c0_36] : memref<32x1xf32, #tpu.memory_space<vmem>>, vector<32x1xf32>
    tpu.vector_store %arg9[%c0_35, %c0_36], %61 {strides = array<i32>} : memref<32x1xf32, #tpu.memory_space<vmem>>, vector<32x1xf32>,
    %c0_i32_37 = arith.constant 0 : i32
    %74 = arith.cmpi eq, %arg1, %c0_i32_37 : i32
    %75 = arith.extui %74 : i1 to i32
    %c0_i32_38 = arith.constant 0 : i32
    %76 = arith.cmpi ne, %75, %c0_i32_38 : i32
    scf.if %76 {
      %c0_39 = arith.constant 0 : index
      %c0_40 = arith.constant 0 : index
      %77 = vector.load %arg7[%c0_39, %c0_40] : memref<32x1xf32, #tpu.memory_space<vmem>>, vector<32x1xf32>
      %c0_41 = arith.constant 0 : index
      %c0_42 = arith.constant 0 : index
      %78 = vector.load %arg8[%c0_41, %c0_42] : memref<32x1xf32, #tpu.memory_space<vmem>>, vector<32x1xf32>
      %79 = math.log %78 : vector<32x1xf32>
      %80 = arith.addf %77, %79 : vector<32x1xf32>
      %c0_43 = arith.constant 0 : index
      %c0_44 = arith.constant 0 : index
      %81 = vector.load %arg9[%c0_43, %c0_44] : memref<32x1xf32, #tpu.memory_space<vmem>>, vector<32x1xf32>
      %c0_45 = arith.constant 0 : index
      %c0_46 = arith.constant 0 : index
      %82 = vector.load %arg10[%c0_45, %c0_46] : memref<32x1xf32, #tpu.memory_space<vmem>>, vector<32x1xf32>
      %83 = math.log %82 : vector<32x1xf32>
      %84 = arith.addf %81, %83 : vector<32x1xf32>
      %85 = arith.addf %80, %84 : vector<32x1xf32>
      %cst_47 = arith.constant 0.000000e+00 : f32
      %86 = vector.broadcast %cst_47 : f32 to vector<32x1xf32>
      %87 = arith.maximumf %85, %86 : vector<32x1xf32>
      %88 = math.absf %85 : vector<32x1xf32>
      %cst_48 = arith.constant 0.000000e+00 : f32
      %89 = vector.broadcast %cst_48 : f32 to vector<32x1xf32>
      %90 = arith.subf %89, %88 : vector<32x1xf32>
      %91 = math.exp %90 : vector<32x1xf32>
      %92 = math.log1p %91 : vector<32x1xf32>
      %93 = arith.addf %87, %92 : vector<32x1xf32>
      %c32_i32_49 = arith.constant 32 : i32
      %94 = arith.muli %arg0, %c32_i32_49 : i32
      %95 = tpu.iota {dimensions = array<i32: 0>} : vector<32x1xi32>
      %96 = vector.broadcast %94 : i32 to vector<32x1xi32>
      %97 = arith.addi %96, %95 : vector<32x1xi32>
      %c24_i32_50 = arith.constant 24 : i32
      %98 = vector.broadcast %c24_i32_50 : i32 to vector<32x1xi32>
      %99 = arith.cmpi slt, %97, %98 : vector<32x1xi32>
      %cst_51 = arith.constant 0.000000e+00 : f32
      %100 = vector.broadcast %cst_51 : f32 to vector<32x1xf32>
      %101 = arith.select %99, %93, %100 : vector<32x1xi1>, vector<32x1xf32>
      %c0_52 = arith.constant 0 : index
      %c0_53 = arith.constant 0 : index
      %102 = vector.load %arg6[%c0_52, %c0_53] : memref<32x1xf32, #tpu.memory_space<vmem>>, vector<32x1xf32>
      tpu.vector_store %arg6[%c0_52, %c0_53], %101 {strides = array<i32>} : memref<32x1xf32, #tpu.memory_space<vmem>>, vector<32x1xf32>,
    } else {
    }
    return
  }
  func.func @transform_0(%arg0: i32, %arg1: i32) -> (i32, i32) {
    %c0_i32 = arith.constant 0 : i32
    %c0_i32_0 = arith.constant 0 : i32
    return %arg0, %c0_i32 : i32, i32
  }
  func.func @transform_1(%arg0: i32, %arg1: i32) -> (i32, i32) {
    %c0_i32 = arith.constant 0 : i32
    %c0_i32_0 = arith.constant 0 : i32
    return %arg1, %c0_i32 : i32, i32
  }
  func.func @transform_2(%arg0: i32, %arg1: i32) -> (i32, i32) {
    %c0_i32 = arith.constant 0 : i32
    %c0_i32_0 = arith.constant 0 : i32
    return %arg0, %c0_i32 : i32, i32
  }
  func.func @transform_3(%arg0: i32, %arg1: i32) -> (i32, i32) {
    %c0_i32 = arith.constant 0 : i32
    %c0_i32_0 = arith.constant 0 : i32
    return %c0_i32, %arg1 : i32, i32
  }
  func.func @transform_4(%arg0: i32, %arg1: i32) -> (i32, i32) {
    %c0_i32 = arith.constant 0 : i32
    %c0_i32_0 = arith.constant 0 : i32
    return %arg0, %c0_i32 : i32, i32
  }
}

</mosaic_0001>

<bundles_post_ra>
// kernel: tpu_custom_call.1
= control target key start
LH: loop header
LB: loop body
LE: loop exit
PB: predicated region body
PF: predicated region fallthrough
CT: control target
= control target key end

     0   :  { %s1169_s15 = smov 0   ;;  %s1171_s16 = smov 0   ;;  %s1540_s0 = inlined_call_operand.vmem [shape: bf16[128,64], index: 0, kind: input, shape index: {}]   ;;  %s1541_s1 = inlined_call_operand.vmem [shape: bf16[128,64], index: 1, kind: input, shape index: {}]   ;;  %s1542_s2 = inlined_call_operand.vmem [shape: s32[128,1], index: 2, kind: input, shape index: {}]   ;;  %s1543_s3 = inlined_call_operand.vmem [shape: s32[1,128], index: 3, kind: input, shape index: {}]   ;;  %s1544_s4 = inlined_call_operand.vmem [shape: f32[128,1], index: 4, kind: output, shape index: {}]  }
   0x1   :  { %s1173_s17 = smov 0  }
   0x2 LB: > { %s26_s18 = sadd.s32 1, %s1134_s16  ;;  %p947_p0 = scmp.ge.s32.totalorder %s1138_s17, 1  ;;  %s1138_s17 = sphi %s1173_s17, %s14_s17   ;;  %s1134_s16 = sphi %s1171_s16, %s1546_s16   ;;  %s1130_s15 = sphi %s1169_s15, %s1545_s15  }
   0x3   : > { %p28_p1 = scmp.ge.s32.totalorder %s26_s18, 4  ;;  %p205_p2 = scmp.lt.s32.totalorder %s1138_s17, 5 }
   0x5   : > { %s1548_s18 = smov (%p28_p1, %s26_s18), 0  ;;  %p206_p3 = pnand %p947_p0, %p205_p2 }
   0x6   : > { %s948_s23 = sshll.u32 (!%p206_p3), %s1130_s15, 2  ;;  %s967_s22 = sshll.u32 (!%p206_p3), %s1130_s15, 5 }
   0x7   : > { %209 = sbr.rel (%p206_p3) target bundleno = 791 (0x317), region = 36  ;;  %p245_p4 = scmp.lt.s32.totalorder (!%p206_p3), %s948_s23, 15 }
   0xc   : > { %v1042_v0 = vld [vmem:[%s1541_s1 + $0x38] sm:$0xff]   ;;  %vm363_vm0 = vcmask 523264   ;;  %v1043_v1 = vld [vmem:[%s1541_s1 + $0x30] sm:$0xff]   ;;  %v1044_v4 = vld [vmem:[%s1541_s1 + $0x28] sm:$0xff]   ;;  %v1140_v5 = vmov 0   ;;  %s1550_s23 = smov (!%p245_p4, %s948_s23), 15  ;;  %v469_v24 = vlaneseq  ;;  %v474_v27 = vstv %s967_s22 }
   0xd   : > { %1004 = vmatprep.subr.msk.bf16.mxu0 %vm363_vm0, %v1042_v0  ;;  %v392_v2 = vsel %vm363_vm0, %v1042_v0, 0  ;;  %v389_v3 = vsel %vm363_vm0, %v1043_v1, 0  ;;  %1041 = vset.pattern.permute.xlu1 %v1140_v5  ;;  %s949_s26 = sshll.u32 %s1550_s23, 2  ;;  %s951_s27 = sshll.u32 %s1550_s23, 3  ;;  %v386_v7 = vsel %vm363_vm0, %v1044_v4, 0  ;;  %v1045_v8 = vld [vmem:[%s1541_s1 + $0x20] sm:$0xff]  }
   0xe   : > { %985 = vmatpush3.bf16.xpose.msra.mxu0 %v392_v2  ;;  %1040 = vset.pattern.permute.xlu0 %v1140_v5  ;;  %s1211_s30 = scalar_lea.vmem %s1540_s0, %s949_s26  ;;  %s260_s7 = scalar_lea.vmem %s1542_s2, %s951_s27  ;;  %v383_v13 = vsel %vm363_vm0, %v1045_v8, 0  ;;  %v1046_v14 = vld [vmem:[%s1541_s1 + $0x18] sm:$0xff]   ;;  %v1047_v16 = vld [vmem:[%s1541_s1 + $0x10] sm:$0xff]   ;;  %v1048_v18 = vld [vmem:[%s1541_s1 + $0x8] sm:$0xff]   ;;  %vm276_vm1 = vcmask 7168   ;;  %v470_v25 = vshrl.u32 %v469_v24, 7 }
   0xf   : > { %1005 = vmatprep.subr.msk.bf16.mxu0 %vm363_vm0, %v1043_v1  ;;  %v1050_v6 = vld [vmem:[%s1211_s30] sm:$0xff]   ;;  %v445_v9 = vld [vmem:[%s260_s7 + $0x10] sm:$0xff]  ;;  %v446_v11 = vld [vmem:[%s260_s7 + $0x18] sm:$0xff]  ;;  %v380_v15 = vsel %vm363_vm0, %v1046_v14, 0  ;;  %v377_v17 = vsel %vm363_vm0, %v1047_v16, 0  ;;  %v374_v19 = vsel %vm363_vm0, %v1048_v18, 0  ;;  %s1515_s28 = scalar_lea.vmem %s1544_s4, %s951_s27 }
  0x10   : > { %1000 = vmatprep.mubr.msk.bf16.mxu0 %vm363_vm0, %v1050_v6  ;;  %v443_v10 = vld [vmem:[%s260_s7] sm:$0xff]  ;;  %455 = vperm.xlu1 %1041, %v445_v9   ;;  %v444_v12 = vld [vmem:[%s260_s7 + $0x8] sm:$0xff]  ;;  %v1141_v23 = vmov -1e+08   ;;  %v472_v26 = vadd.s32 16, %v470_v25  ;;  %v1266_v32 = vand.u32 127, %v469_v24  ;;  %v1278_v41 = vadd.s32 %v474_v27, %v470_v25 }
  0x11   : > { %449 = vperm.xlu0 %1040, %v443_v10   ;;  %v1049_v20 = vld [vmem:[%s1541_s1] sm:$0xff]   ;;  %v1051_v22 = vld [vmem:[%s1211_s30 + $0x8] sm:$0xff]   ;;  %279 = vst.msk [vmem:[#allocation2 + $0x10] sm:$0xff] %vm276_vm1, %v1141_v23  ;;  %277 = vst.msk [vmem:[#allocation2] sm:$0xff] %vm276_vm1, %v1141_v23  ;;  %v471_v35 = vadd.s32 8, %v470_v25  ;;  %v473_v37 = vadd.s32 24, %v470_v25 }
  0x12   : > { %v371_v21 = vsel %vm363_vm0, %v1049_v20, 0  ;;  %278 = vst.msk [vmem:[#allocation2 + $0x8] sm:$0xff] %vm276_vm1, %v1141_v23  ;;  %280 = vst.msk [vmem:[#allocation2 + $0x18] sm:$0xff] %vm276_vm1, %v1141_v23  ;;  %v1260_v28 = vld [vmem:[%s1543_s3] ss:$0 sm:$0xff]  ;;  %v1264_v31 = vadd.s32 %v474_v27, %v472_v26  ;;  %vm484_vm6 = vcmp.lt.s32.totalorder %v1266_v32, 24  ;;  %vm485_vm8 = vcmp.ne.s32.totalorder %v1278_v41, %v1266_v32 }
  0x13   : > { %281 = vst.msk [vmem:[#allocation4] sm:$0xff] %vm276_vm1, %v1141_v23  ;;  %282 = vst.msk [vmem:[#allocation4 + $0x8] sm:$0xff] %vm276_vm1, %v1141_v23  ;;  %v1282_v47 = vadd.s32 %v474_v27, %v471_v35  ;;  %v1295_v53 = vadd.s32 %v474_v27, %v473_v37  ;;  %vm1142_vm12 = vmmov 1  }
  0x14   : > { %458 = vperm.xlu1 %1041, %v446_v11   ;;  %283 = vst.msk [vmem:[#allocation4 + $0x10] sm:$0xff] %vm276_vm1, %v1141_v23  ;;  %284 = vst.msk [vmem:[#allocation4 + $0x18] sm:$0xff] %vm276_vm1, %v1141_v23  ;;  %vm487_vm4 = vcmp.ne.s32.totalorder %v1264_v31, %v1266_v32 }
  0x15   : > { %452 = vperm.xlu0 %1040, %v444_v12   ;;  %vm486_vm11 = vcmp.ne.s32.totalorder %v1282_v47, %v1266_v32 }
  0x16   : > { %987 = vmatpush3.bf16.xpose.msra.mxu0 %v389_v3 }
  0x17   : > { %1006 = vmatprep.subr.msk.bf16.mxu0 %vm363_vm0, %v1044_v4 }
  0x18   : > { %v1386_v23 = vld [vmem:[#allocation2] sm:$0xff] }
  0x19   : > { %v1393_v25 = vld [vmem:[#allocation2 + $0x8] sm:$0xff] }
  0x1e   : > { %989 = vmatpush3.bf16.xpose.msra.mxu0 %v386_v7 }
  0x1f   : > { %1007 = vmatprep.subr.msk.bf16.mxu0 %vm363_vm0, %v1045_v8 }
  0x26   : > { %991 = vmatpush3.bf16.xpose.msra.mxu0 %v383_v13 }
  0x27   : > { %1008 = vmatprep.subr.msk.bf16.mxu0 %vm363_vm0, %v1046_v14 }
  0x2e   : > { %993 = vmatpush3.bf16.xpose.msra.mxu0 %v380_v15 }
  0x2f   : > { %1009 = vmatprep.subr.msk.bf16.mxu0 %vm363_vm0, %v1047_v16  ;;  %v1143_v16 = vmov 0.0  }
  0x30   : > { %287 = vst.msk [vmem:[#allocation3 + $0x10] sm:$0xff] %vm276_vm1, %v1143_v16  ;;  %285 = vst.msk [vmem:[#allocation3] sm:$0xff] %vm276_vm1, %v1143_v16 }
  0x31   : > { %286 = vst.msk [vmem:[#allocation3 + $0x8] sm:$0xff] %vm276_vm1, %v1143_v16  ;;  %288 = vst.msk [vmem:[#allocation3 + $0x18] sm:$0xff] %vm276_vm1, %v1143_v16 }
  0x32   : > { %289 = vst.msk [vmem:[#allocation5] sm:$0xff] %vm276_vm1, %v1143_v16  ;;  %290 = vst.msk [vmem:[#allocation5 + $0x8] sm:$0xff] %vm276_vm1, %v1143_v16 }
  0x33   : > { %291 = vst.msk [vmem:[#allocation5 + $0x10] sm:$0xff] %vm276_vm1, %v1143_v16  ;;  %292 = vst.msk [vmem:[#allocation5 + $0x18] sm:$0xff] %vm276_vm1, %v1143_v16 }
  0x36   : > { %995 = vmatpush3.bf16.xpose.msra.mxu0 %v377_v17  ;;  %v1376_v17 = vld [vmem:[#allocation2 + $0x10] sm:$0xff] }
  0x37   : > { %1010 = vmatprep.subr.msk.bf16.mxu0 %vm363_vm0, %v1048_v18  ;;  %v1378_v18 = vld [vmem:[#allocation4] sm:$0xff] }
  0x3e   : > { %997 = vmatpush3.bf16.xpose.msra.mxu0 %v374_v19 }
  0x3f   : > { %1011 = vmatprep.subr.msk.bf16.mxu0 %vm363_vm0, %v1049_v20 }
  0x46   : > { %999 = vmatpush3.bf16.xpose.msra.mxu0 %v371_v21 }
  0x4d   : > { %1001 = vmatmul.mubr.msk.bf16.vlgmr.msra.gmra.mxu0 %vm363_vm0, %v1051_v22 }
  0x8b   : > { %v1262_v29 = vpop.permute.xlu1 %455 }
  0x8c   : > { %v450_v30 = vpop.permute.xlu0 %449  ;;  %vm466_vm2 = vcmp.eq.s32.totalorder %v1262_v29, %v1260_v28 }
  0x8d   : > { %vm464_vm3 = vcmp.eq.s32.totalorder %v450_v30, %v1260_v28  ;;  %vm491_vm7 = vmand %vm466_vm2, %vm487_vm4  ;;  %vm488_vm4 = vcmp.ne.s32.totalorder %v1295_v53, %v1266_v32  ;;  %v1406_v32 = vld [vmem:[#allocation2 + $0x18] sm:$0xff] }
  0x8e   : > { %vm495_vm10 = vmand %vm491_vm7, %vm484_vm6 }
  0x8f   : > { %v1274_v39 = vpop.permute.xlu1 %458  ;;  %vm497_vm13 = vmxor %vm464_vm3, %vm1142_vm12 }
  0x90   : > { %v453_v46 = vpop.permute.xlu0 %452  ;;  %vm467_vm5 = vcmp.eq.s32.totalorder %v1274_v39, %v1260_v28  ;;  %vm489_vm14 = vmand %vm464_vm3, %vm485_vm8 }
  0x91   : > { %vm465_vm9 = vcmp.eq.s32.totalorder %v453_v46, %v1260_v28  ;;  %vm501_vm0 = vmand %vm497_vm13, %vm484_vm6  ;;  %v1441_v46 = vld [vmem:[#allocation4 + $0x18] sm:$0xff] }
  0x92   : > { %vm490_vm15 = vmand %vm465_vm9, %vm486_vm11 }
  0x93   : > { %vm494_vm7 = vmand %vm490_vm15, %vm484_vm6 }
  0x94   : > { %vm492_vm8 = vmand %vm467_vm5, %vm488_vm4 }
  0x95   : > { %vm496_vm11 = vmand %vm492_vm8, %vm484_vm6  ;;  %vm828_vm8 = vcmp.lt.s32.totalorder %v1295_v53, 24 }
  0x96   : > { %vm500_vm15 = vmxor %vm467_vm5, %vm1142_vm12 }
 0x10d   : > { %v1002_v33 = vpop.f32.mrf.mxu0 }
 0x10e   : > { %v507_v34 = vsub.f32 1.0, %v1002_v33 }
 0x10f   : > { %v428_v36 = vpop.f32.mrf.mxu0 }
 0x110   : > { %v511_v38 = vsel %vm466_vm2, %v507_v34, %v1002_v33  ;;  %v505_v40 = vsub.f32 1.0, %v428_v36  ;;  %v1413_v34 = vld [vmem:[#allocation4 + $0x10] sm:$0xff] }
 0x111   : > { %v515_v42 = vadd.f32 0.35, %v511_v38  ;;  %v1003_v43 = vpop.f32.mrf.mxu0  ;;  %v970_v57 = vadd.f32 -0.35, %v511_v38 }
 0x112   : > { %v509_v44 = vsel %vm464_vm3, %v505_v40, %v428_v36  ;;  %v508_v45 = vsub.f32 1.0, %v1003_v43  ;;  %vm493_vm3 = vmand %vm489_vm14, %vm484_vm6  ;;  %v1426_v40 = vld [vmem:[#allocation4 + $0x8] sm:$0xff] }
 0x113   : > { %v519_v48 = vmax.f32 %v515_v42, 0.0  ;;  %v513_v49 = vadd.f32 0.35, %v509_v44  ;;  %v431_v50 = vpop.f32.mrf.mxu0  ;;  %v968_v60 = vadd.f32 -0.35, %v509_v44  ;;  %vm498_vm14 = vmxor %vm465_vm9, %vm1142_vm12 }
 0x114   : > { %v512_v51 = vsel %vm467_vm5, %v508_v45, %v1003_v43  ;;  %v506_v52 = vsub.f32 1.0, %v431_v50 }
 0x115   : > { %v523_v54 = vmul.f32 48.0, %v519_v48  ;;  %v517_v55 = vmax.f32 %v513_v49, 0.0  ;;  %v516_v56 = vadd.f32 0.35, %v512_v51  ;;  %v971_v7 = vadd.f32 -0.35, %v512_v51 }
 0x116   : > { %v510_v58 = vsel %vm465_vm9, %v506_v52, %v431_v50  ;;  %vm504_vm9 = vmand %vm500_vm15, %vm484_vm6 }
 0x117   : > { %v521_v59 = vmul.f32 48.0, %v517_v55  ;;  %v520_v61 = vmax.f32 %v516_v56, 0.0  ;;  %v514_v62 = vadd.f32 0.35, %v510_v58  ;;  %v531_v63 = vmul.f32 %v970_v57, %v523_v54 }
 0x118   : > { %v969_v5 = vadd.f32 -0.35, %v510_v58 }
 0x119   : > { %v518_v0 = vmax.f32 %v514_v62, 0.0  ;;  %v529_v1 = vmul.f32 %v968_v60, %v521_v59  ;;  %v524_v2 = vmul.f32 48.0, %v520_v61  ;;  %v1314_v3 = vsel %vm495_vm10, %v531_v63, -1e+08  ;;  %vm499_vm10 = vmxor %vm466_vm2, %vm1142_vm12 }
 0x11a   : > { %549 = vmax.xlane.f32.xlu0 %v1314_v3  ;;  %vm503_vm13 = vmand %vm499_vm10, %vm484_vm6 }
 0x11b   : > { %v522_v4 = vmul.f32 48.0, %v518_v0  ;;  %v1321_v6 = vsel %vm501_vm0, %v529_v1, -1e+08  ;;  %v1331_v9 = vsel %vm493_vm3, %v529_v1, -1e+08  ;;  %v532_v10 = vmul.f32 %v971_v7, %v524_v2  ;;  %vm502_vm2 = vmand %vm498_vm14, %vm484_vm6 }
 0x11c   : > { %634 = vmax.xlane.f32.xlu1 %v1321_v6  ;;  %v1351_v13 = vsel %vm503_vm13, %v531_v63, -1e+08  ;;  %vm825_vm6 = vcmp.lt.s32.totalorder %v1278_v41, 24  ;;  %vm827_vm0 = vcmp.lt.s32.totalorder %v1264_v31, 24  ;;  %vm826_vm3 = vcmp.lt.s32.totalorder %v1282_v47, 24 }
 0x11d   : > { %v530_v8 = vmul.f32 %v969_v5, %v522_v4  ;;  %v1345_v12 = vsel %vm496_vm11, %v532_v10, -1e+08  ;;  %v1365_v15 = vsel %vm504_vm9, %v532_v10, -1e+08 }
 0x11e   : > { %545 = vmax.xlane.f32.xlu0 %v1331_v9 }
 0x11f   : > { %v1338_v11 = vsel %vm494_vm7, %v530_v8, -1e+08  ;;  %v1356_v14 = vsel %vm502_vm2, %v530_v8, -1e+08 }
 0x120   : > { %547 = vmax.xlane.f32.xlu1 %v1338_v11 }
 0x122   : > { %551 = vmax.xlane.f32.xlu0 %v1345_v12 }
 0x124   : > { %638 = vmax.xlane.f32.xlu1 %v1351_v13 }
 0x126   : > { %636 = vmax.xlane.f32.xlu0 %v1356_v14 }
 0x12a   : > { %640 = vmax.xlane.f32.xlu0 %v1365_v15 }
 0x1a3   : > { %v550_v19 = vpop.xlane.xlu0 %549 }
 0x1a4   : > { %v1381_v20 = vmax.f32 %v1376_v17, %v550_v19 }
 0x1a5   : > { %v635_v21 = vpop.xlane.xlu1 %634 }
 0x1a6   : > { %v1384_v22 = vmax.f32 %v1378_v18, %v635_v21  ;;  %v563_v24 = vsub.f32 %v1376_v17, %v1381_v20  ;;  %628 = vst.msk [vmem:[#allocation2 + $0x10] sm:$0xff] %vm276_vm1, %v1381_v20  ;;  %589 = vperm.xlu1 %1041, %v1381_v20  }
 0x1a7   : > { %v546_v27 = vpop.xlane.xlu0 %545 }
 0x1a8   : > { %v650_v26 = vsub.f32 %v1378_v18, %v1384_v22  ;;  %714 = vst.msk [vmem:[#allocation4] sm:$0xff] %vm276_vm1, %v1384_v22  ;;  %668 = vperm.xlu0 %1040, %v1384_v22   ;;  %v1401_v28 = vmax.f32 %v1386_v23, %v546_v27 }
 0x1a9   : > { %v548_v29 = vpop.xlane.xlu1 %547 }
 0x1aa   : > { %v1404_v30 = vmax.f32 %v1393_v25, %v548_v29  ;;  %v561_v33 = vsub.f32 %v1386_v23, %v1401_v28  ;;  %626 = vst.msk [vmem:[#allocation2] sm:$0xff] %vm276_vm1, %v1401_v28  ;;  %579 = vperm.xlu1 %1041, %v1401_v28  }
 0x1ab   : > { %v552_v36 = vpop.xlane.xlu0 %551 }
 0x1ac   : > { %v562_v35 = vsub.f32 %v1393_v25, %v1404_v30  ;;  %627 = vst.msk [vmem:[#allocation2 + $0x8] sm:$0xff] %vm276_vm1, %v1404_v30  ;;  %584 = vperm.xlu0 %1040, %v1404_v30   ;;  %v1421_v37 = vmax.f32 %v1406_v32, %v552_v36 }
 0x1ad   : > { %v639_v38 = vpop.xlane.xlu1 %638 }
 0x1ae   : > { %v1424_v39 = vmax.f32 %v1413_v34, %v639_v38  ;;  %v564_v42 = vsub.f32 %v1406_v32, %v1421_v37  ;;  %629 = vst.msk [vmem:[#allocation2 + $0x18] sm:$0xff] %vm276_vm1, %v1421_v37  ;;  %594 = vperm.xlu1 %1041, %v1421_v37   ;;  %v654_v38 = vmul.f32 1.442695, %v650_v26  ;;  %v646_v26 = vld [vmem:[#allocation5] sm:$0xff] }
 0x1af   : > { %v637_v44 = vpop.xlane.xlu0 %636 }
 0x1b0   : > { %v652_v43 = vsub.f32 %v1413_v34, %v1424_v39  ;;  %716 = vst.msk [vmem:[#allocation4 + $0x10] sm:$0xff] %vm276_vm1, %v1424_v39  ;;  %678 = vperm.xlu0 %1040, %v1424_v39   ;;  %v1439_v45 = vmax.f32 %v1426_v40, %v637_v44  ;;  %v565_v44 = vmul.f32 1.442695, %v561_v33  ;;  %v571_v17 = vmul.f32 1.442695, %v564_v42  ;;  %v557_v34 = vld [vmem:[#allocation3] sm:$0xff] }
 0x1b2   : > { %v651_v48 = vsub.f32 %v1426_v40, %v1439_v45  ;;  %715 = vst.msk [vmem:[#allocation4 + $0x8] sm:$0xff] %vm276_vm1, %v1439_v45  ;;  %673 = vperm.xlu1 %1041, %v1439_v45   ;;  %v658_v18 = vmul.f32 1.442695, %v652_v43  ;;  %v558_v40 = vld [vmem:[#allocation3 + $0x8] sm:$0xff] }
 0x1b3   : > { %v641_v49 = vpop.xlane.xlu0 %640 }
 0x1b4   : > { %v1449_v50 = vmax.f32 %v1441_v46, %v641_v49  ;;  %v567_v49 = vmul.f32 1.442695, %v562_v35  ;;  %v656_v20 = vmul.f32 1.442695, %v651_v48 }
 0x1b6   : > { %v653_v51 = vsub.f32 %v1441_v46, %v1449_v50  ;;  %717 = vst.msk [vmem:[#allocation4 + $0x18] sm:$0xff] %vm276_vm1, %v1449_v50  ;;  %683 = vperm.xlu1 %1041, %v1449_v50   ;;  %v560_v50 = vld [vmem:[#allocation3 + $0x18] sm:$0xff] }
 0x1b8   : > { %v660_v22 = vmul.f32 1.442695, %v653_v51 }
 0x221   : > { %v590_v52 = vpop.permute.xlu1 %589 }
 0x222   : > { %v599_v54 = vsub.f32 %v1314_v3, %v590_v52 }
 0x223   : > { %v669_v55 = vpop.permute.xlu0 %668 }
 0x224   : > { %v686_v56 = vsub.f32 %v1321_v6, %v669_v55  ;;  %v605_v57 = vmul.f32 1.442695, %v599_v54  ;;  %v648_v55 = vld [vmem:[#allocation5 + $0x10] sm:$0xff] }
 0x225   : > { %v580_v59 = vpop.permute.xlu1 %579 }
 0x226   : > { %v690_v58 = vmul.f32 1.442695, %v686_v56  ;;  %1052 = vpow2.f32 %v605_v57  ;;  %v597_v60 = vsub.f32 %v1331_v9, %v580_v59 }
 0x227   : > { %v585_v61 = vpop.permute.xlu0 %584 }
 0x228   : > { %1054 = vpow2.f32 %v690_v58  ;;  %v598_v62 = vsub.f32 %v1338_v11, %v585_v61  ;;  %v601_v63 = vmul.f32 1.442695, %v597_v60  ;;  %v647_v61 = vld [vmem:[#allocation5 + $0x8] sm:$0xff] }
 0x229   : > { %v595_v1 = vpop.permute.xlu1 %594 }
 0x22a   : > { %v603_v0 = vmul.f32 1.442695, %v598_v62  ;;  %1056 = vpow2.f32 %v601_v63  ;;  %v600_v2 = vsub.f32 %v1345_v12, %v595_v1 }
 0x22b   : > { %v679_v3 = vpop.permute.xlu0 %678 }
 0x22c   : > { %1058 = vpow2.f32 %v603_v0  ;;  %v688_v4 = vsub.f32 %v1351_v13, %v679_v3  ;;  %v607_v5 = vmul.f32 1.442695, %v600_v2 }
 0x22d   : > { %v674_v7 = vpop.permute.xlu1 %673 }
 0x22e   : > { %v694_v6 = vmul.f32 1.442695, %v688_v4  ;;  %1060 = vpow2.f32 %v607_v5  ;;  %v687_v8 = vsub.f32 %v1356_v14, %v674_v7  ;;  %v649_v5 = vld [vmem:[#allocation5 + $0x18] sm:$0xff] }
 0x230   : > { %1062 = vpow2.f32 %v694_v6  ;;  %v692_v9 = vmul.f32 1.442695, %v687_v8 }
 0x231   : > { %v684_v10 = vpop.permute.xlu1 %683 }
 0x232   : > { %1064 = vpow2.f32 %v692_v9  ;;  %v689_v11 = vsub.f32 %v1365_v15, %v684_v10  ;;  %v569_v15 = vmul.f32 1.442695, %v563_v24  ;;  %v559_v24 = vld [vmem:[#allocation3 + $0x10] sm:$0xff] }
 0x233   : > { %v1053_v16 = vpop.eup %1052 }
 0x234   : > { %v696_v21 = vmul.f32 1.442695, %v689_v11  ;;  %613 = vadd.xlane.f32.xlu0 %v1053_v16 }
 0x235   : > { %v1055_v19 = vpop.eup %1054 }
 0x236   : > { %698 = vadd.xlane.f32.xlu1 %v1055_v19  ;;  %1066 = vpow2.f32 %v696_v21 }
 0x237   : > { %v1057_v12 = vpop.eup %1056  ;;  %1068 = vpow2.f32 %v569_v15 }
 0x238   : > { %609 = vadd.xlane.f32.xlu0 %v1057_v12  ;;  %1070 = vpow2.f32 %v654_v38  ;;  %v741_v38 = vld [vmem:[#allocation4] sm:$0xff] }
 0x239   : > { %v1059_v13 = vpop.eup %1058  ;;  %1072 = vpow2.f32 %v565_v44  ;;  %v721_v44 = vld [vmem:[#allocation2] sm:$0xff] }
 0x23a   : > { %611 = vadd.xlane.f32.xlu1 %v1059_v13  ;;  %1074 = vpow2.f32 %v567_v49 }
 0x23b   : > { %v1061_v27 = vpop.eup %1060  ;;  %1076 = vpow2.f32 %v571_v17 }
 0x23c   : > { %615 = vadd.xlane.f32.xlu0 %v1061_v27  ;;  %1078 = vpow2.f32 %v658_v18 }
 0x23d   : > { %v1063_v29 = vpop.eup %1062  ;;  %1080 = vpow2.f32 %v656_v20 }
 0x23e   : > { %702 = vadd.xlane.f32.xlu1 %v1063_v29  ;;  %1082 = vpow2.f32 %v660_v22 }
 0x23f   : > { %v1065_v14 = vpop.eup %1064 }
 0x240   : > { %700 = vadd.xlane.f32.xlu0 %v1065_v14 }
 0x243   : > { %v1067_v36 = vpop.eup %1066 }
 0x244   : > { %704 = vadd.xlane.f32.xlu0 %v1067_v36  ;;  %v1069_v23 = vpop.eup %1068 }
 0x245   : > { %v1071_v25 = vpop.eup %1070  ;;  %v575_v28 = vmul.f32 %v1069_v23, %v559_v24 }
 0x246   : > { %v1073_v30 = vpop.eup %1072  ;;  %v662_v33 = vmul.f32 %v1071_v25, %v646_v26  ;;  %v723_v26 = vld [vmem:[#allocation2 + $0x10] sm:$0xff] }
 0x247   : > { %v1075_v35 = vpop.eup %1074  ;;  %v573_v43 = vmul.f32 %v1073_v30, %v557_v34 }
 0x248   : > { %v1077_v45 = vpop.eup %1076  ;;  %v574_v48 = vmul.f32 %v1075_v35, %v558_v40  ;;  %v722_v40 = vld [vmem:[#allocation2 + $0x8] sm:$0xff] }
 0x249   : > { %v1079_v51 = vpop.eup %1078  ;;  %v576_v57 = vmul.f32 %v1077_v45, %v560_v50 }
 0x24a   : > { %v1081_v58 = vpop.eup %1080  ;;  %v664_v60 = vmul.f32 %v1079_v51, %v648_v55 }
 0x24b   : > { %v663_v2 = vmul.f32 %v1081_v58, %v647_v61  ;;  %v1083_v3 = vpop.eup %1082 }
 0x24c   : > { %v665_v9 = vmul.f32 %v1083_v3, %v649_v5 }
 0x2bd   : > { %v614_v32 = vpop.xlane.xlu0 %613 }
 0x2be   : > { %v619_v37 = vadd.f32 %v614_v32, %v575_v28  ;;  %v743_v28 = vld [vmem:[#allocation4 + $0x10] sm:$0xff] }
 0x2bf   : > { %v699_v39 = vpop.xlane.xlu1 %698 }
 0x2c0   : > { %v706_v42 = vadd.f32 %v699_v39, %v662_v33  ;;  %624 = vst.msk [vmem:[#allocation3 + $0x10] sm:$0xff] %vm276_vm1, %v619_v37 }
 0x2c1   : > { %v610_v46 = vpop.xlane.xlu0 %609 }
 0x2c2   : > { %710 = vst.msk [vmem:[#allocation5] sm:$0xff] %vm276_vm1, %v706_v42  ;;  %v617_v52 = vadd.f32 %v610_v46, %v573_v43  ;;  %v742_v42 = vld [vmem:[#allocation4 + $0x8] sm:$0xff] }
 0x2c3   : > { %v612_v54 = vpop.xlane.xlu1 %611 }
 0x2c4   : > { %v618_v56 = vadd.f32 %v612_v54, %v574_v48  ;;  %622 = vst.msk [vmem:[#allocation3] sm:$0xff] %vm276_vm1, %v617_v52 }
 0x2c5   : > { %v616_v59 = vpop.xlane.xlu0 %615 }
 0x2c6   : > { %623 = vst.msk [vmem:[#allocation3 + $0x8] sm:$0xff] %vm276_vm1, %v618_v56  ;;  %v620_v62 = vadd.f32 %v616_v59, %v576_v57  ;;  %v724_v56 = vld [vmem:[#allocation2 + $0x18] sm:$0xff] }
 0x2c7   : > { %v703_v63 = vpop.xlane.xlu1 %702  ;;  %v727_v6 = vld [vmem:[#allocation3 + $0x10] sm:$0xff]  ;;  %v744_v57 = vld [vmem:[#allocation4 + $0x18] sm:$0xff] }
 0x2c8   : > { %v708_v0 = vadd.f32 %v703_v63, %v664_v60  ;;  %625 = vst.msk [vmem:[#allocation3 + $0x18] sm:$0xff] %vm276_vm1, %v620_v62 }
 0x2c9   : > { %v745_v1 = vld [vmem:[#allocation5] sm:$0xff]  ;;  %v701_v4 = vpop.xlane.xlu0 %700 }
 0x2ca   : > { %1084 = vlog2.f32 %v745_v1  ;;  %712 = vst.msk [vmem:[#allocation5 + $0x10] sm:$0xff] %vm276_vm1, %v708_v0  ;;  %v707_v7 = vadd.f32 %v701_v4, %v663_v2 }
 0x2cb   : > { %v725_v8 = vld [vmem:[#allocation3] sm:$0xff] }
 0x2cc   : > { %1086 = vlog2.f32 %v725_v8  ;;  %711 = vst.msk [vmem:[#allocation5 + $0x8] sm:$0xff] %vm276_vm1, %v707_v7 }
 0x2cd   : > { %1088 = vlog2.f32 %v727_v6  ;;  %v726_v10 = vld [vmem:[#allocation3 + $0x8] sm:$0xff]  ;;  %v705_v11 = vpop.xlane.xlu0 %704 }
 0x2ce   : > { %v709_v16 = vadd.f32 %v705_v11, %v665_v9  ;;  %1090 = vlog2.f32 %v726_v10 }
 0x2cf   : > { %v728_v19 = vld [vmem:[#allocation3 + $0x18] sm:$0xff] }
 0x2d0   : > { %713 = vst.msk [vmem:[#allocation5 + $0x18] sm:$0xff] %vm276_vm1, %v709_v16 }
 0x2d1   : > { %v747_v21 = vld [vmem:[#allocation5 + $0x10] sm:$0xff] }
 0x2d2   : > { %1092 = vlog2.f32 %v747_v21 }
 0x2d3   : > { %1094 = vlog2.f32 %v728_v19  ;;  %v746_v12 = vld [vmem:[#allocation5 + $0x8] sm:$0xff] }
 0x2d4   : > { %1096 = vlog2.f32 %v746_v12 }
 0x2d7   : > { %v1085_v13 = vpop.eup %1084  ;;  %v748_v27 = vld [vmem:[#allocation5 + $0x18] sm:$0xff] }
 0x2d8   : > { %v750_v29 = vmul.f32 0.6931472, %v1085_v13  ;;  %1098 = vlog2.f32 %v748_v27 }
 0x2d9   : > { %v1087_v14 = vpop.eup %1086 }
 0x2da   : > { %v1089_v36 = vpop.eup %1088  ;;  %v730_v15 = vmul.f32 0.6931472, %v1087_v14  ;;  %v757_v49 = vadd.f32 %v750_v29, %v741_v38 }
 0x2db   : > { %v1091_v18 = vpop.eup %1090  ;;  %v734_v20 = vmul.f32 0.6931472, %v1089_v36 }
 0x2dc   : > { %v737_v17 = vadd.f32 %v730_v15, %v721_v44  ;;  %v732_v32 = vmul.f32 0.6931472, %v1091_v18 }
 0x2dd   : > { %v739_v34 = vadd.f32 %v734_v20, %v723_v26 }
 0x2de   : > { %v1496_v23 = vadd.f32 %v757_v49, %v737_v17  ;;  %v738_v46 = vadd.f32 %v732_v32, %v722_v40 }
 0x2df   : > { %v1093_v22 = vpop.eup %1092 }
 0x2e0   : > { %v754_v24 = vmul.f32 0.6931472, %v1093_v22  ;;  %v1095_v25 = vpop.eup %1094  ;;  %v769_v30 = vand.u32 2147483647, %v1496_v23  ;;  %v765_v15 = vmax.f32 %v1496_v23, 0.0 }
 0x2e1   : > { %v1097_v33 = vpop.eup %1096  ;;  %v736_v48 = vmul.f32 0.6931472, %v1095_v25 }
 0x2e2   : > { %v759_v35 = vadd.f32 %v754_v24, %v743_v28  ;;  %v773_v37 = vsub.f32 0.0, %v769_v30  ;;  %v752_v39 = vmul.f32 0.6931472, %v1097_v33 }
 0x2e3   : > { %v740_v59 = vadd.f32 %v736_v48, %v724_v56 }
 0x2e4   : > { %v1499_v43 = vadd.f32 %v759_v35, %v739_v34  ;;  %v777_v45 = vmul.f32 1.442695, %v773_v37  ;;  %v758_v50 = vadd.f32 %v752_v39, %v742_v42 }
 0x2e5   : > { %v1099_v51 = vpop.eup %1098 }
 0x2e6   : > { %v771_v52 = vand.u32 2147483647, %v1499_v43  ;;  %1100 = vpow2.f32 %v777_v45  ;;  %v1502_v54 = vadd.f32 %v758_v50, %v738_v46  ;;  %v756_v55 = vmul.f32 0.6931472, %v1099_v51 }
 0x2e7   : > { %v767_v41 = vmax.f32 %v1499_v43, 0.0 }
 0x2e8   : > { %v775_v58 = vsub.f32 0.0, %v771_v52  ;;  %v770_v60 = vand.u32 2147483647, %v1502_v54  ;;  %v760_v61 = vadd.f32 %v756_v55, %v744_v57  ;;  %v766_v37 = vmax.f32 %v1502_v54, 0.0 }
 0x2ea   : > { %v781_v62 = vmul.f32 1.442695, %v775_v58  ;;  %v774_v63 = vsub.f32 0.0, %v770_v60  ;;  %v1505_v0 = vadd.f32 %v760_v61, %v740_v59 }
 0x2ec   : > { %1102 = vpow2.f32 %v781_v62  ;;  %v779_v1 = vmul.f32 1.442695, %v774_v63  ;;  %v772_v2 = vand.u32 2147483647, %v1505_v0  ;;  %v768_v50 = vmax.f32 %v1505_v0, 0.0 }
 0x2ee   : > { %1104 = vpow2.f32 %v779_v1  ;;  %v776_v3 = vsub.f32 0.0, %v772_v2 }
 0x2f0   : > { %v783_v4 = vmul.f32 1.442695, %v776_v3 }
 0x2f2   : > { %1106 = vpow2.f32 %v783_v4 }
 0x2f3   : > { %v1101_v5 = vpop.eup %1100 }
 0x2f4   : > { %v785_v6 = vadd.f32 1.0, %v1101_v5  ;;  %v788_v10 = vmul.f32 -0.5, %v1101_v5  ;;  %v791_v12 = vand.u32 2147483647, %v1101_v5 }
 0x2f6   : > { %1108 = vlog2.f32 %v785_v6  ;;  %v789_v19 = vadd.f32 1.0, %v788_v10  ;;  %vm792_vm5 = vcmp.lt.f32.partialorder %v791_v12, 0.0004427343 }
 0x2f8   : > { %v790_v14 = vmul.f32 %v1101_v5, %v789_v19 }
 0x2f9   : > { %v1103_v7 = vpop.eup %1102 }
 0x2fa   : > { %v803_v8 = vadd.f32 1.0, %v1103_v7  ;;  %v806_v13 = vmul.f32 -0.5, %v1103_v7  ;;  %v809_v49 = vand.u32 2147483647, %v1103_v7 }
 0x2fb   : > { %v1105_v9 = vpop.eup %1104 }
 0x2fc   : > { %1110 = vlog2.f32 %v803_v8  ;;  %v794_v11 = vadd.f32 1.0, %v1105_v9  ;;  %v797_v36 = vmul.f32 -0.5, %v1105_v9  ;;  %v807_v38 = vadd.f32 1.0, %v806_v13 }
 0x2fd   : > { %v800_v26 = vand.u32 2147483647, %v1105_v9  ;;  %vm810_vm12 = vcmp.lt.f32.partialorder %v809_v49, 0.0004427343 }
 0x2fe   : > { %1112 = vlog2.f32 %v794_v11  ;;  %v798_v20 = vadd.f32 1.0, %v797_v36  ;;  %v808_v23 = vmul.f32 %v1103_v7, %v807_v38 }
 0x2ff   : > { %v1107_v16 = vpop.eup %1106  ;;  %vm801_vm4 = vcmp.lt.f32.partialorder %v800_v26, 0.0004427343 }
 0x300   : > { %v812_v21 = vadd.f32 1.0, %v1107_v16  ;;  %v815_v22 = vmul.f32 -0.5, %v1107_v16  ;;  %v799_v34 = vmul.f32 %v1105_v9, %v798_v20  ;;  %v818_v39 = vand.u32 2147483647, %v1107_v16 }
 0x302   : > { %1114 = vlog2.f32 %v812_v21  ;;  %v816_v35 = vadd.f32 1.0, %v815_v22  ;;  %vm819_vm7 = vcmp.lt.f32.partialorder %v818_v39, 0.0004427343 }
 0x303   : > { %v1109_v27 = vpop.eup %1108 }
 0x304   : > { %v787_v29 = vmul.f32 0.6931472, %v1109_v27  ;;  %v817_v46 = vmul.f32 %v1107_v16, %v816_v35 }
 0x306   : > { %v793_v44 = vsel %vm792_vm5, %v790_v14, %v787_v29 }
 0x307   : > { %v821_v17 = vadd.f32 %v793_v44, %v765_v15 }
 0x309   : > { %v1111_v18 = vpop.eup %1110  ;;  %v829_v24 = vsel %vm825_vm6, %v821_v17, 0.0 }
 0x30a   : > { %v805_v25 = vmul.f32 0.6931472, %v1111_v18  ;;  %833 = vst.msk [vmem:[%s1515_s28] sm:$0xff] %vm276_vm1, %v829_v24 }
 0x30b   : > { %v1113_v28 = vpop.eup %1112 }
 0x30c   : > { %v811_v30 = vsel %vm810_vm12, %v808_v23, %v805_v25  ;;  %v796_v33 = vmul.f32 0.6931472, %v1113_v28 }
 0x30d   : > { %v823_v32 = vadd.f32 %v811_v30, %v767_v41 }
 0x30e   : > { %v802_v42 = vsel %vm801_vm4, %v799_v34, %v796_v33 }
 0x30f   : > { %v831_v40 = vsel %vm827_vm0, %v823_v32, 0.0  ;;  %v1115_v43 = vpop.eup %1114  ;;  %v822_v45 = vadd.f32 %v802_v42, %v766_v37 }
 0x310   : > { %835 = vst.msk [vmem:[%s1515_s28 + $0x10] sm:$0xff] %vm276_vm1, %v831_v40  ;;  %v814_v31 = vmul.f32 0.6931472, %v1115_v43 }
 0x311   : > { %v830_v48 = vsel %vm826_vm3, %v822_v45, 0.0 }
 0x312   : > { %834 = vst.msk [vmem:[%s1515_s28 + $0x8] sm:$0xff] %vm276_vm1, %v830_v48  ;;  %v820_v51 = vsel %vm819_vm7, %v817_v46, %v814_v31 }
 0x313   : > { %v824_v52 = vadd.f32 %v820_v51, %v768_v50 }
 0x315   : > { %v832_v47 = vsel %vm828_vm8, %v824_v52, 0.0 }
 0x316   : > { %836 = vst.msk [vmem:[%s1515_s28 + $0x18] sm:$0xff] %vm276_vm1, %v832_v47 }
 0x317 PF: > { %s14_s17 = sadd.s32 1, %s1138_s17   ;;  %s1545_s15 = smov %s1134_s16 }
 0x318   : > { %p11_p5 = scmp.ge.s32.totalorder %s14_s17, 6   ;;  %s1546_s16 = smov %s1548_s18 }
 0x31a   :  { %13 = sbr.rel (!%p11_p5) target bundleno = 2 (0x2), region = 83 }

</bundles_post_ra>
